<compile_context>
chip_gen: v7x
topology: tpu7x:2x2x1
jax: 0.10.0
libtpu: 0.0.40
codegen_flags: <defaults>
</compile_context>

<pallas_src>
import jax
import jax.numpy as jnp
from jax.experimental import pallas as pl
from jax.experimental.pallas import tpu as pltpu

EPS = 1e-6

# Scoped-VMEM limit that fits every generation (v7x physical VMEM is only 64 MiB).
_VMEM_LIMIT = 48 * 1024 * 1024
# Budget used when sizing the per-step batch B (headroom below the scoped limit).
_VMEM_BUDGET = 40 * 1024 * 1024


def _hel_edge_kernel(pred_ref, t_ref, num_ref, den_ref, twpad_ref, rs_ref):
    # pred_ref, t_ref : (B, H, W) input blocks
    # num_ref, den_ref: (1, 1, B) per-plane scalar outputs (B on lanes)
    # twpad_ref       : (B, H, W+4) f32 scratch (target, W zero-padded by 2)
    # rs_ref          : (B, H+4, W) f32 scratch (5-tap W sums, H zero-padded by 2)
    B, H, W = t_ref.shape

    t = t_ref[...].astype(jnp.float32)
    p = pred_ref[...].astype(jnp.float32)

    # ---- zero-padded separable 5x5 box sum (VPU only, shifts = offset vloads) ----
    # Pad borders are re-zeroed every step (scratch contents are not guaranteed
    # across grid steps / cores); the cost is O(B*(H+W)) stores, negligible.
    twpad_ref[:, :, 0:2] = jnp.zeros((B, H, 2), jnp.float32)
    twpad_ref[:, :, W + 2:W + 4] = jnp.zeros((B, H, 2), jnp.float32)
    twpad_ref[:, :, 2:W + 2] = t

    rs_ref[:, 0:2, :] = jnp.zeros((B, 2, W), jnp.float32)
    rs_ref[:, H + 2:H + 4, :] = jnp.zeros((B, 2, W), jnp.float32)
    rs_ref[:, 2:H + 2, :] = (twpad_ref[:, :, 0:W] + twpad_ref[:, :, 1:W + 1]
                             + twpad_ref[:, :, 2:W + 2] + twpad_ref[:, :, 3:W + 3]
                             + twpad_ref[:, :, 4:W + 4])

    box = (rs_ref[:, 0:H, :] + rs_ref[:, 1:H + 1, :] + rs_ref[:, 2:H + 2, :]
           + rs_ref[:, 3:H + 3, :] + rs_ref[:, 4:H + 4, :])          # (B, H, W)

    # edge mask: (target - box/25 != 0)  <=>  (box != 25*target) for binary masks.
    mask = (box != 25.0 * t).astype(jnp.float32)

    vals = mask * jnp.abs(p - t)
    num = jnp.sum(jnp.sum(vals, axis=2), axis=1)                     # (B,)
    den = jnp.sum(jnp.sum(mask, axis=2), axis=1)                     # (B,)
    num_ref[0, 0, :] = num
    den_ref[0, 0, :] = den


def _pick_batch(nc, h, w, itemsize):
    """Largest divisor of nc fitting the VMEM budget, with >= 2 grid steps (v7x)."""
    per_plane = (2 * 2 * h * w * itemsize            # pred+target blocks, double-buffered
                 + (h * (w + 4) + (h + 4) * w) * 4   # pad / row-sum f32 scratches
                 + 4 * h * w * 4)                    # live f32 temporaries (t, p, box, vals)
    if per_plane > _VMEM_BUDGET:
        # TODO(synk): very large spatial planes would need (H, W) halo tiling.
        raise NotImplementedError(
            f"HEL Pallas kernel: plane {h}x{w} too large for the per-step VMEM budget")
    b_budget = max(1, _VMEM_BUDGET // per_plane)
    b_cap = pl.cdiv(nc, 2) if nc >= 2 else 1         # never collapse to a single grid step
    b_max = max(1, min(nc, b_budget, b_cap))
    b = 1
    for d in range(1, b_max + 1):                    # largest divisor of nc <= b_max
        if nc % d == 0:
            b = d
    return b


def hel_forward(pred, target, eps=EPS):
    """HEL.forward: mean over (N, C) of the per-channel edge loss."""
    N, C, H, W = pred.shape
    NC = N * C
    p = pred.reshape(NC, H, W)
    t = target.reshape(NC, H, W)

    itemsize = max(pred.dtype.itemsize, target.dtype.itemsize)
    B = _pick_batch(NC, H, W, itemsize)
    NG = NC // B                                      # exact: B divides NC

    num, den = pl.pallas_call(
        _hel_edge_kernel,
        out_shape=(jax.ShapeDtypeStruct((NG, 1, B), jnp.float32),
                   jax.ShapeDtypeStruct((NG, 1, B), jnp.float32)),
        grid=(NG,),
        in_specs=[pl.BlockSpec((B, H, W), lambda i: (i, 0, 0)),
                  pl.BlockSpec((B, H, W), lambda i: (i, 0, 0))],
        out_specs=(pl.BlockSpec((1, 1, B), lambda i: (i, 0, 0)),
                   pl.BlockSpec((1, 1, B), lambda i: (i, 0, 0))),
        scratch_shapes=[pltpu.VMEM((B, H, W + 4), jnp.float32),
                        pltpu.VMEM((B, H + 4, W), jnp.float32)],
        compiler_params=pltpu.CompilerParams(
            dimension_semantics=("parallel",),
            vmem_limit_bytes=_VMEM_LIMIT),
    )(p, t)

    numerator = num.reshape(NC)
    denominator = den.reshape(NC)
    return (numerator / (denominator + eps)).mean()

# TODO(synk): HEL.region_loss is defined in the PyTorch module but never used by
# forward(), so it is not implemented here.


def _hel_forward_ref(pred, target, eps=EPS):
    """Pure-JAX reference for verification."""
    pred = pred.astype(jnp.float32)
    target = target.astype(jnp.float32)
    box = jax.lax.reduce_window(
        target, 0.0, jax.lax.add,
        window_dimensions=(1, 1, 5, 5),
        window_strides=(1, 1, 1, 1),
        padding=((0, 0), (0, 0), (2, 2), (2, 2)))
    # For binary-mask targets this equals PyTorch's (target - box/25 != 0) exactly,
    # independent of how the divide is lowered.
    mask = (box != 25.0 * target).astype(jnp.float32)
    num = jnp.sum(mask * jnp.abs(pred - target), axis=(2, 3))
    den = jnp.sum(mask, axis=(2, 3)) + eps
    return (num / den).mean()


if __name__ == "__main__":
    key = jax.random.PRNGKey(0)
    k1, k2 = jax.random.split(key)
    N, C, H, W = 2, 4, 16, 16
    pred = jax.random.uniform(k1, (N, C, H, W), dtype=jnp.float32)
    # Binary-mask-like target with a uniform foreground patch so some 5x5 windows
    # are constant (the pooled == target -> mask == 0 case that previously broke).
    target = (jax.random.uniform(k2, (N, C, H, W)) > 0.5).astype(jnp.float32)
    target = target.at[:, :, 4:13, 4:13].set(1.0)

    out = jax.block_until_ready(hel_forward(pred, target))
    ref = _hel_forward_ref(pred, target)
    assert jnp.allclose(out, ref, rtol=1e-5, atol=1e-5), (out, ref)

    print("KERNEL_OK")
</pallas_src>

<mosaic_0001>
module attributes {stable_mosaic.version = 11 : i64} {
  func.func @_hel_edge_kernel(%arg0: i32, %arg1: memref<4x16x16xf32, #tpu.memory_space<vmem>>, %arg2: memref<4x16x16xf32, #tpu.memory_space<vmem>>, %arg3: memref<1x1x4xf32, #tpu.memory_space<vmem>>, %arg4: memref<1x1x4xf32, #tpu.memory_space<vmem>>, %arg5: memref<4x16x20xf32, #tpu.memory_space<vmem>>, %arg6: memref<4x20x16xf32, #tpu.memory_space<vmem>>) attributes {dimension_semantics = [#tpu.dimension_semantics<parallel>], iteration_bounds = array<i64: 2>, scalar_prefetch = 0 : i64, scratch_operands = 2 : i64, tpu.core_type = #tpu.core_type<tc>, window_params = [{transform_indices = @transform_0, window_bounds = array<i64: 4, 16, 16>}, {transform_indices = @transform_1, window_bounds = array<i64: 4, 16, 16>}, {transform_indices = @transform_2, window_bounds = array<i64: 1, 1, 4>}, {transform_indices = @transform_3, window_bounds = array<i64: 1, 1, 4>}]} {
    %c0 = arith.constant 0 : index
    %c0_0 = arith.constant 0 : index
    %c0_1 = arith.constant 0 : index
    %0 = vector.load %arg2[%c0, %c0_0, %c0_1] : memref<4x16x16xf32, #tpu.memory_space<vmem>>, vector<4x16x16xf32>
    %c0_2 = arith.constant 0 : index
    %c0_3 = arith.constant 0 : index
    %c0_4 = arith.constant 0 : index
    %1 = vector.load %arg1[%c0_2, %c0_3, %c0_4] : memref<4x16x16xf32, #tpu.memory_space<vmem>>, vector<4x16x16xf32>
    %cst = arith.constant 0.000000e+00 : f32
    %2 = vector.broadcast %cst : f32 to vector<4x16x2xf32>
    %c0_5 = arith.constant 0 : index
    %c0_6 = arith.constant 0 : index
    %c0_7 = arith.constant 0 : index
    %3 = vector.load %arg5[%c0_5, %c0_6, %c0_7] : memref<4x16x20xf32, #tpu.memory_space<vmem>>, vector<4x16x2xf32>
    tpu.vector_store %arg5[%c0_5, %c0_6, %c0_7], %2 {strides = array<i32>} : memref<4x16x20xf32, #tpu.memory_space<vmem>>, vector<4x16x2xf32>,
    %cst_8 = arith.constant 0.000000e+00 : f32
    %4 = vector.broadcast %cst_8 : f32 to vector<4x16x2xf32>
    %c0_9 = arith.constant 0 : index
    %c0_10 = arith.constant 0 : index
    %c18 = arith.constant 18 : index
    %5 = vector.load %arg5[%c0_9, %c0_10, %c18] : memref<4x16x20xf32, #tpu.memory_space<vmem>>, vector<4x16x2xf32>
    tpu.vector_store %arg5[%c0_9, %c0_10, %c18], %4 {strides = array<i32>} : memref<4x16x20xf32, #tpu.memory_space<vmem>>, vector<4x16x2xf32>,
    %c0_11 = arith.constant 0 : index
    %c0_12 = arith.constant 0 : index
    %c2 = arith.constant 2 : index
    %6 = vector.load %arg5[%c0_11, %c0_12, %c2] : memref<4x16x20xf32, #tpu.memory_space<vmem>>, vector<4x16x16xf32>
    tpu.vector_store %arg5[%c0_11, %c0_12, %c2], %0 {strides = array<i32>} : memref<4x16x20xf32, #tpu.memory_space<vmem>>, vector<4x16x16xf32>,
    %cst_13 = arith.constant 0.000000e+00 : f32
    %7 = vector.broadcast %cst_13 : f32 to vector<4x2x16xf32>
    %c0_14 = arith.constant 0 : index
    %c0_15 = arith.constant 0 : index
    %c0_16 = arith.constant 0 : index
    %8 = vector.load %arg6[%c0_14, %c0_15, %c0_16] : memref<4x20x16xf32, #tpu.memory_space<vmem>>, vector<4x2x16xf32>
    tpu.vector_store %arg6[%c0_14, %c0_15, %c0_16], %7 {strides = array<i32>} : memref<4x20x16xf32, #tpu.memory_space<vmem>>, vector<4x2x16xf32>,
    %cst_17 = arith.constant 0.000000e+00 : f32
    %9 = vector.broadcast %cst_17 : f32 to vector<4x2x16xf32>
    %c0_18 = arith.constant 0 : index
    %c18_19 = arith.constant 18 : index
    %c0_20 = arith.constant 0 : index
    %10 = vector.load %arg6[%c0_18, %c18_19, %c0_20] : memref<4x20x16xf32, #tpu.memory_space<vmem>>, vector<4x2x16xf32>
    tpu.vector_store %arg6[%c0_18, %c18_19, %c0_20], %9 {strides = array<i32>} : memref<4x20x16xf32, #tpu.memory_space<vmem>>, vector<4x2x16xf32>,
    %c0_21 = arith.constant 0 : index
    %c0_22 = arith.constant 0 : index
    %c0_23 = arith.constant 0 : index
    %11 = vector.load %arg5[%c0_21, %c0_22, %c0_23] : memref<4x16x20xf32, #tpu.memory_space<vmem>>, vector<4x16x16xf32>
    %c0_24 = arith.constant 0 : index
    %c0_25 = arith.constant 0 : index
    %c1 = arith.constant 1 : index
    %12 = vector.load %arg5[%c0_24, %c0_25, %c1] : memref<4x16x20xf32, #tpu.memory_space<vmem>>, vector<4x16x16xf32>
    %13 = arith.addf %11, %12 : vector<4x16x16xf32>
    %c0_26 = arith.constant 0 : index
    %c0_27 = arith.constant 0 : index
    %c2_28 = arith.constant 2 : index
    %14 = vector.load %arg5[%c0_26, %c0_27, %c2_28] : memref<4x16x20xf32, #tpu.memory_space<vmem>>, vector<4x16x16xf32>
    %15 = arith.addf %13, %14 : vector<4x16x16xf32>
    %c0_29 = arith.constant 0 : index
    %c0_30 = arith.constant 0 : index
    %c3 = arith.constant 3 : index
    %16 = vector.load %arg5[%c0_29, %c0_30, %c3] : memref<4x16x20xf32, #tpu.memory_space<vmem>>, vector<4x16x16xf32>
    %17 = arith.addf %15, %16 : vector<4x16x16xf32>
    %c0_31 = arith.constant 0 : index
    %c0_32 = arith.constant 0 : index
    %c4 = arith.constant 4 : index
    %18 = vector.load %arg5[%c0_31, %c0_32, %c4] : memref<4x16x20xf32, #tpu.memory_space<vmem>>, vector<4x16x16xf32>
    %19 = arith.addf %17, %18 : vector<4x16x16xf32>
    %c0_33 = arith.constant 0 : index
    %c2_34 = arith.constant 2 : index
    %c0_35 = arith.constant 0 : index
    %20 = vector.load %arg6[%c0_33, %c2_34, %c0_35] : memref<4x20x16xf32, #tpu.memory_space<vmem>>, vector<4x16x16xf32>
    tpu.vector_store %arg6[%c0_33, %c2_34, %c0_35], %19 {strides = array<i32>} : memref<4x20x16xf32, #tpu.memory_space<vmem>>, vector<4x16x16xf32>,
    %c0_36 = arith.constant 0 : index
    %c0_37 = arith.constant 0 : index
    %c0_38 = arith.constant 0 : index
    %21 = vector.load %arg6[%c0_36, %c0_37, %c0_38] : memref<4x20x16xf32, #tpu.memory_space<vmem>>, vector<4x16x16xf32>
    %c0_39 = arith.constant 0 : index
    %c1_40 = arith.constant 1 : index
    %c0_41 = arith.constant 0 : index
    %22 = vector.load %arg6[%c0_39, %c1_40, %c0_41] : memref<4x20x16xf32, #tpu.memory_space<vmem>>, vector<4x16x16xf32>
    %23 = arith.addf %21, %22 : vector<4x16x16xf32>
    %c0_42 = arith.constant 0 : index
    %c2_43 = arith.constant 2 : index
    %c0_44 = arith.constant 0 : index
    %24 = vector.load %arg6[%c0_42, %c2_43, %c0_44] : memref<4x20x16xf32, #tpu.memory_space<vmem>>, vector<4x16x16xf32>
    %25 = arith.addf %23, %24 : vector<4x16x16xf32>
    %c0_45 = arith.constant 0 : index
    %c3_46 = arith.constant 3 : index
    %c0_47 = arith.constant 0 : index
    %26 = vector.load %arg6[%c0_45, %c3_46, %c0_47] : memref<4x20x16xf32, #tpu.memory_space<vmem>>, vector<4x16x16xf32>
    %27 = arith.addf %25, %26 : vector<4x16x16xf32>
    %c0_48 = arith.constant 0 : index
    %c4_49 = arith.constant 4 : index
    %c0_50 = arith.constant 0 : index
    %28 = vector.load %arg6[%c0_48, %c4_49, %c0_50] : memref<4x20x16xf32, #tpu.memory_space<vmem>>, vector<4x16x16xf32>
    %29 = arith.addf %27, %28 : vector<4x16x16xf32>
    %cst_51 = arith.constant 2.500000e+01 : f32
    %30 = vector.broadcast %cst_51 : f32 to vector<4x16x16xf32>
    %31 = arith.mulf %30, %0 : vector<4x16x16xf32>
    %32 = arith.cmpf one, %29, %31 : vector<4x16x16xf32>
    %33 = arith.extui %32 : vector<4x16x16xi1> to vector<4x16x16xi32>
    %34 = arith.sitofp %33 : vector<4x16x16xi32> to vector<4x16x16xf32>
    %35 = arith.subf %1, %0 : vector<4x16x16xf32>
    %36 = math.absf %35 : vector<4x16x16xf32>
    %37 = arith.mulf %34, %36 : vector<4x16x16xf32>
    %cst_52 = arith.constant dense<0.000000e+00> : vector<4x16xf32>
    %38 = vector.multi_reduction <add>, %37, %cst_52 [2] : vector<4x16x16xf32> to vector<4x16xf32>
    %cst_53 = arith.constant dense<0.000000e+00> : vector<4xf32>
    %39 = vector.multi_reduction <add>, %38, %cst_53 [1] : vector<4x16xf32> to vector<4xf32>
    %cst_54 = arith.constant dense<0.000000e+00> : vector<4x16xf32>
    %40 = vector.multi_reduction <add>, %34, %cst_54 [2] : vector<4x16x16xf32> to vector<4x16xf32>
    %cst_55 = arith.constant dense<0.000000e+00> : vector<4xf32>
    %41 = vector.multi_reduction <add>, %40, %cst_55 [1] : vector<4x16xf32> to vector<4xf32>
    %c0_56 = arith.constant 0 : index
    %c0_57 = arith.constant 0 : index
    %c0_58 = arith.constant 0 : index
    %42 = vector.load %arg3[%c0_56, %c0_57, %c0_58] : memref<1x1x4xf32, #tpu.memory_space<vmem>>, vector<1x1x4xf32>
    %43 = vector.shape_cast %42 : vector<1x1x4xf32> to vector<4xf32>
    %44 = vector.shape_cast %39 : vector<4xf32> to vector<1x1x4xf32>
    tpu.vector_store %arg3[%c0_56, %c0_57, %c0_58], %44 {strides = array<i32>} : memref<1x1x4xf32, #tpu.memory_space<vmem>>, vector<1x1x4xf32>,
    %c0_59 = arith.constant 0 : index
    %c0_60 = arith.constant 0 : index
    %c0_61 = arith.constant 0 : index
    %45 = vector.load %arg4[%c0_59, %c0_60, %c0_61] : memref<1x1x4xf32, #tpu.memory_space<vmem>>, vector<1x1x4xf32>
    %46 = vector.shape_cast %45 : vector<1x1x4xf32> to vector<4xf32>
    %47 = vector.shape_cast %41 : vector<4xf32> to vector<1x1x4xf32>
    tpu.vector_store %arg4[%c0_59, %c0_60, %c0_61], %47 {strides = array<i32>} : memref<1x1x4xf32, #tpu.memory_space<vmem>>, vector<1x1x4xf32>,
    return
  }
  func.func @transform_0(%arg0: i32) -> (i32, i32, i32) {
    %c0_i32 = arith.constant 0 : i32
    %c0_i32_0 = arith.constant 0 : i32
    %c0_i32_1 = arith.constant 0 : i32
    return %arg0, %c0_i32, %c0_i32_0 : i32, i32, i32
  }
  func.func @transform_1(%arg0: i32) -> (i32, i32, i32) {
    %c0_i32 = arith.constant 0 : i32
    %c0_i32_0 = arith.constant 0 : i32
    %c0_i32_1 = arith.constant 0 : i32
    return %arg0, %c0_i32, %c0_i32_0 : i32, i32, i32
  }
  func.func @transform_2(%arg0: i32) -> (i32, i32, i32) {
    %c0_i32 = arith.constant 0 : i32
    %c0_i32_0 = arith.constant 0 : i32
    %c0_i32_1 = arith.constant 0 : i32
    return %arg0, %c0_i32, %c0_i32_0 : i32, i32, i32
  }
  func.func @transform_3(%arg0: i32) -> (i32, i32, i32) {
    %c0_i32 = arith.constant 0 : i32
    %c0_i32_0 = arith.constant 0 : i32
    %c0_i32_1 = arith.constant 0 : i32
    return %arg0, %c0_i32, %c0_i32_0 : i32, i32, i32
  }
}

</mosaic_0001>

<bundles_post_ra>
// kernel: tpu_custom_call.1
= control target key start
LH: loop header
LB: loop body
LE: loop exit
PB: predicated region body
PF: predicated region fallthrough
CT: control target
= control target key end

     0   :  { %9 = vsyncpa [#allocation5], 0  ;;  %s1717_s0 = inlined_call_operand.hbm [shape: f32[8,16,16], index: 0, kind: input, shape index: {}]   ;;  %s1718_s1 = inlined_call_operand.hbm [shape: f32[8,16,16], index: 1, kind: input, shape index: {}]   ;;  %s1719_s2 = inlined_call_operand.hbm [shape: f32[2,1,4], index: 2, kind: output, shape index: {0}]   ;;  %s1720_s3 = inlined_call_operand.hbm [shape: f32[2,1,4], index: 3, kind: output, shape index: {1}]  }
   0x1   :  { %11 = vsyncpa [#allocation5 + $0x1], 0 }
   0x2   :  { %12 = vsyncpa [#allocation8], 0 }
   0x3   :  { %14 = vsyncpa [#allocation8 + $0x1], 0 }
   0x4   :  { %15 = vsyncpa [#allocation6], 0 }
   0x5   :  { %17 = vsyncpa [#allocation6 + $0x1], 0 }
   0x6   :  { %18 = vsyncpa [#allocation11], 0 }
   0x7   :  { %20 = vsyncpa [#allocation11 + $0x1], 0  ;;  %s1217_s12 = smov 0   ;;  %s1219_s13 = smov 0  }
   0x8   :  { %s1221_s14 = smov 0   ;;  %s1223_s15 = smov 0  }
   0x9 LB: > { %s1238_s16 = sadd.s32 4294967295, %s1183_s15   ;;  %s927_s17 = sadd.s32 4294967294, %s1183_s15   ;;  %s1183_s15 = sphi %s1223_s15, %s1736_s15   ;;  %s1179_s14 = sphi %s1221_s14, %s1735_s14   ;;  %s1175_s13 = sphi %s1219_s13, %s1734_s13   ;;  %s1171_s12 = sphi %s1217_s12, %s1733_s12  }
   0xa   : > { %s1242_s18 = sadd.s32 1, %s1183_s15   ;;  %s33_s19 = sadd.s32 1, %s1179_s14 }
   0xb   : > { %s30_s20 = ssub.s32 %s1183_s15, %s1242_s18  ;;  %p40_p0 = scmp.ne.s32.totalorder %s1179_s14, %s1175_s13 }
   0xc   : > { %p31_p1 = scmp.eq.s32.totalorder %s30_s20, 0  ;;  %p41_p2 = scmp.eq.s32.totalorder %s1183_s15, 0 }
   0xd   : > { %p46_p3 = scmp.ne.s32.totalorder %s1175_s13, %s1171_s12  ;;  %p47_p4 = scmp.eq.s32.totalorder %s1238_s16, 0 }
   0xe   : > { %s1254_s21 = scalar_select %p31_p1, %s1179_s14, %s33_s19  }
   0xf   : > { %p1256_p5 = por %p41_p2, %p40_p0  ;;  %p1260_p6 = por %p47_p4, %p46_p3 }
  0x10   : > { %p96_p7 = scmp.eq.s32.totalorder %s1238_s16, 1  ;;  %p102_p8 = scmp.eq.s32.totalorder %s927_s17, 1 }
  0x11   : > { %s1724_s23 = scalar_select %p1260_p6, 1, 0 }
  0x12   : > { %p979_p10 = scmp.lt.s32.totalorder %s1183_s15, 2  ;;  %p1267_p11 = por %p96_p7, %p40_p0 }
  0x13   : > { %p1271_p12 = por %p102_p8, %p46_p3  ;;  %s1276_s26 = sand.u32 1, %s1179_s14  }
  0x14   : > { %s1725_s24 = scalar_select %p1267_p11, 1, 0 }
  0x15   : > { %s1726_s25 = scalar_select %p1271_p12, 1, 0 }
  0x16   : > { %s954_s27 = sshll.u32 %s1183_s15, 10  ;;  %s930_s28 = sshll.u32 %s1276_s26, 6 }
  0x17   : > { %s1285_s4 = scalar_lea.hbm %s1717_s0, %s954_s27  ;;  %s152_s5 = scalar_lea.vmem [#allocation4], %s930_s28 }
  0x18   : > { %s160_s6 = sshll.u32 %s152_s5, 4  ;;  %p1291_p13 = pnand %p979_p10, %p1256_p5  ;;  %s1295_s6 = int_to_ptr.vmem [resolvable:$true] %s160_s6 }
  0x19   : > { %s149_s8 = scalar_lea.sflag [#allocation5], %s1276_s26  ;;  %s1021_s9 = scalar_lea.hbm %s1285_s4, 1024 }
  0x1a   : > { %p1022_p0 = scmp.ne.s32.totalorder %s1285_s4, %s1021_s9  ;;  %p1023_p1 = pneg %p1291_p13 }
  0x1b   : > { %s1026_s17 = scalar_lea.hbm %s1717_s0, 2048  ;;  %p1027_p4 = scmp.lt.u32.totalorder %s1285_s4, %s1717_s0 }
  0x1c   : > { %p1024_p2 = pnand %p1023_p1, %p1022_p0  ;;  %p1028_p5 = scmp.lt.u32.totalorder %s1026_s17, %s1021_s9 }
  0x1d   : > { %p1030_p8 = scmp.lt.u32.totalorder %s1021_s9, %s1285_s4 }
  0x1e   : > { %p1025_p3 = pneg %p1024_p2  ;;  %p1029_p7 = por %p1028_p5, %p1027_p4 }
  0x20   : > { %p1031_p10 = por %p1030_p8, %p1029_p7 }
  0x22   : > { %p1032_p9 = pnand %p1031_p10, %p1025_p3 }
  0x24   : > { %1035 = shalt.err (!%p1032_p9)
}
  0x25   : > { %s1036_s22 = scalar_lea.vmem %s1295_s6, 1024  ;;  %s1185_s29 = smov [#allocation4]  }
  0x26   : > { %p1037_p0 = scmp.ne.s32.totalorder %s1295_s6, %s1036_s22  ;;  %s1041_s30 = sshll.u32 %s1185_s29, 4  ;;  %s1042_s30 = int_to_ptr.vmem [resolvable:$false] %s1041_s30 }
  0x27   : > { %s1043_s5 = scalar_lea.vmem %s1042_s30, 2048  ;;  %p1044_p11 = scmp.lt.s32.totalorder %s1295_s6, %s1042_s30 }
  0x28   : > { %p1039_p2 = pnand %p1037_p0, %p1023_p1  ;;  %p1045_p4 = scmp.lt.s32.totalorder %s1043_s5, %s1036_s22 }
  0x2a   : > { %p1040_p12 = pneg %p1039_p2  ;;  %p1046_p5 = por %p1045_p4, %p1044_p11 }
  0x2c   : > { %p1047_p7 = pnand %p1046_p5, %p1040_p12 }
  0x2e   : > { %1050 = shalt.err (!%p1047_p7)
}
  0x2f   : > { %s1186_s9 = smov 128   ;;  %s1187_s10 = smov 8  }
  0x30   : > { %968 = dma.hbm_to_vmem [thread:$0]  (!%p1291_p13), %s1285_s4, 1024, %s1295_s6, %s149_s8, %s1186_s9, %s1186_s9, %s1187_s10  }
  0x31   : > { %p938_p9 = scmp.ge.s32.totalorder %s1183_s15, 1  ;;  %p190_p11 = scmp.lt.s32.totalorder %s1183_s15, 3 }
  0x32   : > { %s1339_s20 = scalar_lea.hbm %s1718_s1, %s954_s27  ;;  %s174_s22 = scalar_lea.vmem [#allocation7], %s930_s28 }
  0x33   : > { %p1330_p12 = pnand %p938_p9, %p190_p11  ;;  %s182_s29 = sshll.u32 %s174_s22, 4  ;;  %s1343_s29 = int_to_ptr.vmem [resolvable:$true] %s182_s29 }
  0x34   : > { %s171_s4 = scalar_lea.sflag [#allocation8], %s1276_s26  ;;  %s1051_s6 = scalar_lea.hbm %s1339_s20, 1024 }
  0x35   : > { %p1052_p3 = scmp.ne.s32.totalorder %s1339_s20, %s1051_s6  ;;  %s1056_s27 = scalar_lea.hbm %s1718_s1, 2048 }
  0x36   : > { %p1057_p0 = scmp.lt.u32.totalorder %s1339_s20, %s1718_s1  ;;  %p1058_p2 = scmp.lt.u32.totalorder %s1056_s27, %s1051_s6 }
  0x37   : > { %p1054_p8 = pnand %p1052_p3, %p1023_p1  ;;  %p1060_p5 = scmp.lt.u32.totalorder %s1051_s6, %s1339_s20 }
  0x38   : > { %p1059_p4 = por %p1058_p2, %p1057_p0 }
  0x39   : > { %p1055_p10 = pneg %p1054_p8 }
  0x3a   : > { %p1061_p7 = por %p1060_p5, %p1059_p4 }
  0x3c   : > { %p1062_p9 = pnand %p1061_p7, %p1055_p10 }
  0x3e   : > { %1065 = shalt.err (!%p1062_p9)
}
  0x3f   : > { %s1066_s28 = scalar_lea.vmem %s1343_s29, 1024  ;;  %s1188_s19 = smov [#allocation7]  }
  0x40   : > { %p1067_p11 = scmp.ne.s32.totalorder %s1343_s29, %s1066_s28  ;;  %s1071_s22 = sshll.u32 %s1188_s19, 4  ;;  %s1072_s22 = int_to_ptr.vmem [resolvable:$false] %s1071_s22 }
  0x41   : > { %s1073_s8 = scalar_lea.vmem %s1072_s22, 2048  ;;  %p1074_p6 = scmp.lt.s32.totalorder %s1343_s29, %s1072_s22 }
  0x42   : > { %p1069_p3 = pnand %p1067_p11, %p1023_p1  ;;  %p1075_p0 = scmp.lt.s32.totalorder %s1073_s8, %s1066_s28 }
  0x44   : > { %p1070_p8 = pneg %p1069_p3  ;;  %p1076_p2 = por %p1075_p0, %p1074_p6 }
  0x46   : > { %p1077_p4 = pnand %p1076_p2, %p1070_p8 }
  0x48   : > { %1080 = shalt.err (!%p1077_p4)
}
  0x49   : > { %971 = dma.hbm_to_vmem [thread:$0]  (!%p1291_p13), %s1339_s20, 1024, %s1343_s29, %s171_s4, %s1186_s9, %s1186_s9, %s1187_s10  }
  0x4a   : > { %194 = sbr.rel (%p1330_p12) target bundleno = 756 (0x2f4), region = 28  ;;  %s1377_s6 = sand.u32 (!%p1330_p12), 1, %s1175_s13  }
  0x4b   : > { %s939_s30 = sshll.u32 (!%p1330_p12), %s1377_s6, 6  ;;  %s197_s27 = scalar_lea.sflag (!%p1330_p12), [#allocation5], %s1377_s6 }
  0x4c   : > { %s1381_s7 = scalar_lea.vmem (!%p1330_p12), [#allocation4], %s939_s30  ;;  %p1729_p6 = scmp.ne.s32.totalorder (!%p1330_p12), %s1724_s23, 0 }
  0x51   : > { %1154 = dma.done.wait (%p1729_p6), %s197_s27, 1024  }
  0x52   : > { %1156 = vsyncadd (%p1729_p6), %s197_s27, 4294966272  ;;  %s206_s26 = scalar_lea.sflag [#allocation8], %s1377_s6  ;;  %s1388_s9 = scalar_lea.vmem [#allocation7], %s939_s30 }
  0x53   : > { %1158 = dma.done.wait (%p1729_p6), %s206_s26, 1024  }
  0x54   : > { %1160 = vsyncadd (%p1729_p6), %s206_s26, 4294966272  ;;  %vm258_vm0 = vcmask 15360   ;;  %vm267_vm1 = vcmask 162960   ;;  %v1189_v0 = vmov 0.0   ;;  %v1419_v1 = vld [vmem:[%s1388_s9] sm:$0xff]  ;;  %v1422_v2 = vld [vmem:[%s1388_s9 + $0x10] sm:$0xff] }
  0x55   : > { %259 = vst.msk [vmem:[#allocation2] sm:$0xff] %vm258_vm0, %v1189_v0  ;;  %260 = vst.msk [vmem:[#allocation2 + $0x8] sm:$0xff] %vm258_vm0, %v1189_v0  ;;  %s1190_s23 = smov 2   ;;  %v1427_v3 = vld [vmem:[%s1388_s9 + $0x8] sm:$0xff]  ;;  %v1430_v4 = vld [vmem:[%s1388_s9 + $0x18] sm:$0xff]  ;;  %vm308_vm2 = vcmask 146448  }
  0x56   : > { %261 = vst.msk [vmem:[#allocation2 + $0x10] sm:$0xff] %vm258_vm0, %v1189_v0  ;;  %262 = vst.msk [vmem:[#allocation2 + $0x18] sm:$0xff] %vm258_vm0, %v1189_v0  ;;  %284 = vrot.lane.b32.xlu0 %v1419_v1, %s1190_s23  ;;  %288 = vrot.lane.b32.xlu1 %v1422_v2, %s1190_s23  ;;  %v1435_v5 = vld [vmem:[%s1388_s9 + $0x20] sm:$0xff]  ;;  %v1438_v6 = vld [vmem:[%s1388_s9 + $0x28] sm:$0xff]  ;;  %s1191_s10 = smov 127   ;;  %s1192_s11 = smov 126  }
  0x57   : > { %263 = vst.msk [vmem:[#allocation2 + $0x20] sm:$0xff] %vm258_vm0, %v1189_v0  ;;  %264 = vst.msk [vmem:[#allocation2 + $0x28] sm:$0xff] %vm258_vm0, %v1189_v0  ;;  %v1443_v7 = vld [vmem:[%s1388_s9 + $0x30] sm:$0xff]  ;;  %v1446_v8 = vld [vmem:[%s1388_s9 + $0x38] sm:$0xff]  ;;  %s1193_s20 = smov 125   ;;  %vm317_vm3 = vcmask 123904  }
  0x58   : > { %265 = vst.msk [vmem:[#allocation2 + $0x30] sm:$0xff] %vm258_vm0, %v1189_v0  ;;  %266 = vst.msk [vmem:[#allocation2 + $0x38] sm:$0xff] %vm258_vm0, %v1189_v0  ;;  %s1194_s29 = smov 124   ;;  %vm470_vm4 = vcmask 130048   ;;  %vm650_vm13 = vcmask 130112   ;;  %vm679_vm14 = vcmask 1041409  }
  0x59   : > { %268 = vst.msk [vmem:[#allocation2] sm:$0xff] %vm267_vm1, %v1189_v0  ;;  %270 = vst.msk [vmem:[#allocation2 + $0x10] sm:$0xff] %vm267_vm1, %v1189_v0  ;;  %vm683_vm15 = vcmask 1043459   ;;  %vm681_vm0 = vcmask 1042434   ;;  %s949_s4 = sshll.u32 %s1238_s16, 4  ;;  %s233_s5 = scalar_lea.vmem [#allocation9], %s1377_s6 }
  0x5a   : > { %269 = vst.msk [vmem:[#allocation2 + $0x8] sm:$0xff] %vm267_vm1, %v1189_v0  ;;  %271 = vst.msk [vmem:[#allocation2 + $0x18] sm:$0xff] %vm267_vm1, %v1189_v0  ;;  %286 = vrot.lane.b32.xlu0 %v1427_v3, %s1190_s23  ;;  %290 = vrot.lane.b32.xlu1 %v1430_v4, %s1190_s23  ;;  %s797_s17 = sshll.u32 %s233_s5, 4  ;;  %s1631_s22 = scalar_lea.hbm %s1719_s2, %s949_s4  ;;  %s1633_s17 = int_to_ptr.vmem [resolvable:$true] %s797_s17 }
  0x5b   : > { %272 = vst.msk [vmem:[#allocation2 + $0x20] sm:$0xff] %vm267_vm1, %v1189_v0  ;;  %273 = vst.msk [vmem:[#allocation2 + $0x28] sm:$0xff] %vm267_vm1, %v1189_v0  ;;  %s239_s8 = scalar_lea.vmem [#allocation10], %s1377_s6  ;;  %s781_s27 = scalar_lea.sflag [#allocation6], %s1377_s6 }
  0x5c   : > { %274 = vst.msk [vmem:[#allocation2 + $0x30] sm:$0xff] %vm267_vm1, %v1189_v0  ;;  %275 = vst.msk [vmem:[#allocation2 + $0x38] sm:$0xff] %vm267_vm1, %v1189_v0  ;;  %vm686_vm1 = vcmask 125952   ;;  %s1638_s30 = sshll.u32 %s239_s8, 4  ;;  %p1730_p1 = scmp.ne.s32.totalorder %s1725_s24, 0  ;;  %s1672_s30 = int_to_ptr.vmem [resolvable:$true] %s1638_s30 }
  0x5d   : > { %318 = vst.msk [vmem:[#allocation3] sm:$0x3] %vm317_vm3, %v1189_v0  ;;  %319 = vst.msk [vmem:[#allocation3 + $0x18] sm:$0x3] %vm317_vm3, %v1189_v0  ;;  %s1195_s26 = smov [#allocation9]  }
  0x5e   : > { %292 = vrot.lane.b32.xlu0 %v1435_v5, %s1190_s23  ;;  %294 = vrot.lane.b32.xlu1 %v1438_v6, %s1190_s23  ;;  %320 = vst.msk [vmem:[#allocation3 + $0x30] sm:$0x3] %vm317_vm3, %v1189_v0  ;;  %321 = vst.msk [vmem:[#allocation3 + $0x48] sm:$0x3] %vm317_vm3, %v1189_v0  ;;  %s1085_s9 = sshll.u32 %s1195_s26, 4  ;;  %s1086_s9 = int_to_ptr.vmem [resolvable:$false] %s1085_s9 }
  0x5f   : > { %322 = vst.msk [vmem:[#allocation3 + $0x12] sm:$0x3] %vm317_vm3, %v1189_v0  ;;  %323 = vst.msk [vmem:[#allocation3 + $0x2a] sm:$0x3] %vm317_vm3, %v1189_v0  ;;  %p1088_p5 = scmp.lt.s32.totalorder %s1633_s17, %s1086_s9 }
  0x60   : > { %324 = vst.msk [vmem:[#allocation3 + $0x42] sm:$0x3] %vm317_vm3, %v1189_v0  ;;  %325 = vst.msk [vmem:[#allocation3 + $0x5a] sm:$0x3] %vm317_vm3, %v1189_v0 }
  0x62   : > { %296 = vrot.lane.b32.xlu0 %v1443_v7, %s1190_s23  ;;  %298 = vrot.lane.b32.xlu1 %v1446_v8, %s1190_s23  ;;  %s1087_s23 = scalar_lea.vmem %s1086_s9, 32 }
  0xc8   : > { %v285_v9 = vpop.permute.xlu0 %284  ;;  %v289_v10 = vpop.permute.xlu1 %288 }
  0xc9   : > { %309 = vst.msk [vmem:[#allocation2] sm:$0xff] %vm308_vm2, %v285_v9  ;;  %311 = vst.msk [vmem:[#allocation2 + $0x10] sm:$0xff] %vm308_vm2, %v289_v10 }
  0xcc   : > { %v287_v11 = vpop.permute.xlu0 %286  ;;  %v291_v12 = vpop.permute.xlu1 %290 }
  0xcd   : > { %310 = vst.msk [vmem:[#allocation2 + $0x8] sm:$0xff] %vm308_vm2, %v287_v11  ;;  %312 = vst.msk [vmem:[#allocation2 + $0x18] sm:$0xff] %vm308_vm2, %v291_v12 }
  0xd0   : > { %v293_v13 = vpop.permute.xlu0 %292  ;;  %v1454_v14 = vld [vmem:[#allocation2] sm:$0xff]  ;;  %v295_v15 = vpop.permute.xlu1 %294  ;;  %v1459_v16 = vld [vmem:[#allocation2 + $0x10] sm:$0xff] }
  0xd1   : > { %313 = vst.msk [vmem:[#allocation2 + $0x20] sm:$0xff] %vm308_vm2, %v293_v13  ;;  %342 = vrot.lane.b32.xlu0 %v1454_v14, %s1191_s10  ;;  %314 = vst.msk [vmem:[#allocation2 + $0x28] sm:$0xff] %vm308_vm2, %v295_v15 }
  0xd4   : > { %v297_v17 = vpop.permute.xlu0 %296  ;;  %v1461_v18 = vld [vmem:[#allocation2 + $0x8] sm:$0xff]  ;;  %v299_v19 = vpop.permute.xlu1 %298  ;;  %v1467_v20 = vld [vmem:[#allocation2 + $0x18] sm:$0xff] }
  0xd5   : > { %315 = vst.msk [vmem:[#allocation2 + $0x30] sm:$0xff] %vm308_vm2, %v297_v17  ;;  %346 = vrot.lane.b32.xlu0 %v1459_v16, %s1191_s10  ;;  %344 = vrot.lane.b32.xlu1 %v1461_v18, %s1191_s10  ;;  %316 = vst.msk [vmem:[#allocation2 + $0x38] sm:$0xff] %vm308_vm2, %v299_v19  ;;  %vm771_vm2 = vcmask 24576  }
  0xd8   : > { %v1469_v21 = vld [vmem:[#allocation2 + $0x20] sm:$0xff]  ;;  %v1473_v22 = vld [vmem:[#allocation2 + $0x28] sm:$0xff] }
  0xd9   : > { %348 = vrot.lane.b32.xlu1 %v1467_v20, %s1191_s10  ;;  %350 = vrot.lane.b32.xlu0 %v1469_v21, %s1191_s10 }
  0xdc   : > { %v1475_v23 = vld [vmem:[#allocation2 + $0x30] sm:$0xff]  ;;  %v1479_v24 = vld [vmem:[#allocation2 + $0x38] sm:$0xff] }
  0xdd   : > { %352 = vrot.lane.b32.xlu1 %v1473_v22, %s1191_s10  ;;  %354 = vrot.lane.b32.xlu0 %v1475_v23, %s1191_s10 }
  0xe1   : > { %356 = vrot.lane.b32.xlu1 %v1479_v24, %s1191_s10  ;;  %374 = vrot.lane.b32.xlu0 %v1454_v14, %s1192_s11 }
  0xe5   : > { %376 = vrot.lane.b32.xlu1 %v1461_v18, %s1192_s11  ;;  %378 = vrot.lane.b32.xlu0 %v1459_v16, %s1192_s11 }
  0xe9   : > { %380 = vrot.lane.b32.xlu1 %v1467_v20, %s1192_s11  ;;  %382 = vrot.lane.b32.xlu0 %v1469_v21, %s1192_s11 }
  0xed   : > { %384 = vrot.lane.b32.xlu1 %v1473_v22, %s1192_s11  ;;  %386 = vrot.lane.b32.xlu0 %v1475_v23, %s1192_s11 }
  0xf1   : > { %388 = vrot.lane.b32.xlu1 %v1479_v24, %s1192_s11  ;;  %406 = vrot.lane.b32.xlu0 %v1454_v14, %s1193_s20 }
  0xf5   : > { %408 = vrot.lane.b32.xlu1 %v1461_v18, %s1193_s20  ;;  %410 = vrot.lane.b32.xlu0 %v1459_v16, %s1193_s20 }
  0xf9   : > { %412 = vrot.lane.b32.xlu1 %v1467_v20, %s1193_s20  ;;  %414 = vrot.lane.b32.xlu0 %v1469_v21, %s1193_s20 }
  0xfd   : > { %416 = vrot.lane.b32.xlu1 %v1473_v22, %s1193_s20  ;;  %418 = vrot.lane.b32.xlu0 %v1475_v23, %s1193_s20 }
 0x101   : > { %420 = vrot.lane.b32.xlu1 %v1479_v24, %s1193_s20  ;;  %438 = vrot.lane.b32.xlu0 %v1454_v14, %s1194_s29 }
 0x105   : > { %440 = vrot.lane.b32.xlu1 %v1461_v18, %s1194_s29  ;;  %442 = vrot.lane.b32.xlu0 %v1459_v16, %s1194_s29 }
 0x109   : > { %444 = vrot.lane.b32.xlu1 %v1467_v20, %s1194_s29  ;;  %446 = vrot.lane.b32.xlu0 %v1469_v21, %s1194_s29 }
 0x10d   : > { %448 = vrot.lane.b32.xlu1 %v1473_v22, %s1194_s29  ;;  %450 = vrot.lane.b32.xlu0 %v1475_v23, %s1194_s29 }
 0x111   : > { %452 = vrot.lane.b32.xlu1 %v1479_v24, %s1194_s29 }
 0x143   : > { %v343_v25 = vpop.permute.xlu0 %342 }
 0x144   : > { %v366_v46 = vadd.f32 %v343_v25, %v1454_v14 }
 0x147   : > { %v345_v26 = vpop.permute.xlu1 %344  ;;  %v347_v27 = vpop.permute.xlu0 %346 }
 0x148   : > { %v367_v50 = vadd.f32 %v345_v26, %v1461_v18  ;;  %v368_v51 = vadd.f32 %v347_v27, %v1459_v16 }
 0x14b   : > { %v349_v28 = vpop.permute.xlu1 %348  ;;  %v351_v29 = vpop.permute.xlu0 %350 }
 0x14c   : > { %v369_v58 = vadd.f32 %v349_v28, %v1467_v20  ;;  %v370_v59 = vadd.f32 %v351_v29, %v1469_v21 }
 0x14f   : > { %v353_v30 = vpop.permute.xlu1 %352  ;;  %v355_v31 = vpop.permute.xlu0 %354 }
 0x150   : > { %v371_v13 = vadd.f32 %v353_v30, %v1473_v22  ;;  %v372_v14 = vadd.f32 %v355_v31, %v1475_v23 }
 0x153   : > { %v357_v32 = vpop.permute.xlu1 %356  ;;  %v375_v33 = vpop.permute.xlu0 %374 }
 0x154   : > { %v398_v49 = vadd.f32 %v375_v33, %v366_v46  ;;  %v373_v28 = vadd.f32 %v357_v32, %v1479_v24  ;;  %v551_v24 = vmul.f32 25.0, %v1419_v1 }
 0x157   : > { %v377_v34 = vpop.permute.xlu1 %376  ;;  %v379_v35 = vpop.permute.xlu0 %378 }
 0x158   : > { %v399_v55 = vadd.f32 %v377_v34, %v367_v50  ;;  %v400_v56 = vadd.f32 %v379_v35, %v368_v51 }
 0x15b   : > { %v381_v36 = vpop.permute.xlu1 %380  ;;  %v383_v37 = vpop.permute.xlu0 %382 }
 0x15c   : > { %v401_v9 = vadd.f32 %v381_v36, %v369_v58  ;;  %v402_v10 = vadd.f32 %v383_v37, %v370_v59  ;;  %v553_v58 = vmul.f32 25.0, %v1422_v2  ;;  %v251_v59 = vld [vmem:[%s1381_s7 + $0x8] sm:$0xff] }
 0x15f   : > { %v385_v38 = vpop.permute.xlu1 %384  ;;  %v387_v39 = vpop.permute.xlu0 %386 }
 0x160   : > { %v403_v19 = vadd.f32 %v385_v38, %v371_v13  ;;  %v404_v20 = vadd.f32 %v387_v39, %v372_v14 }
 0x163   : > { %v389_v40 = vpop.permute.xlu1 %388  ;;  %v407_v41 = vpop.permute.xlu0 %406 }
 0x164   : > { %v430_v52 = vadd.f32 %v407_v41, %v398_v49  ;;  %v405_v34 = vadd.f32 %v389_v40, %v373_v28  ;;  %v1528_v41 = vld [vmem:[%s1381_s7] sm:$0xff] }
 0x167   : > { %v409_v42 = vpop.permute.xlu1 %408  ;;  %v411_v43 = vpop.permute.xlu0 %410 }
 0x168   : > { %v431_v60 = vadd.f32 %v409_v42, %v399_v55  ;;  %v432_v61 = vadd.f32 %v411_v43, %v400_v56 }
 0x16b   : > { %v413_v44 = vpop.permute.xlu1 %412  ;;  %v415_v45 = vpop.permute.xlu0 %414 }
 0x16c   : > { %v433_v15 = vadd.f32 %v413_v44, %v401_v9  ;;  %v434_v16 = vadd.f32 %v415_v45, %v402_v10  ;;  %v1543_v9 = vld [vmem:[%s1381_s7 + $0x20] sm:$0xff] }
 0x16f   : > { %v417_v47 = vpop.permute.xlu1 %416  ;;  %v419_v48 = vpop.permute.xlu0 %418 }
 0x170   : > { %v435_v22 = vadd.f32 %v417_v47, %v403_v19  ;;  %v436_v29 = vadd.f32 %v419_v48, %v404_v20  ;;  %v1534_v48 = vld [vmem:[%s1381_s7 + $0x10] sm:$0xff] }
 0x173   : > { %v421_v53 = vpop.permute.xlu1 %420  ;;  %v439_v54 = vpop.permute.xlu0 %438 }
 0x174   : > { %v462_v57 = vadd.f32 %v439_v54, %v430_v52  ;;  %v437_v32 = vadd.f32 %v421_v53, %v405_v34 }
 0x176   : > { %471 = vst.msk [vmem:[#allocation3 + $0x2] sm:$0xff] %vm470_vm4, %v462_v57  ;;  %v583_v57 = vsub.f32 %v1528_v41, %v1419_v1 }
 0x177   : > { %v441_v62 = vpop.permute.xlu1 %440  ;;  %v443_v63 = vpop.permute.xlu0 %442 }
 0x178   : > { %v463_v11 = vadd.f32 %v441_v62, %v431_v60  ;;  %v464_v12 = vadd.f32 %v443_v63, %v432_v61  ;;  %v552_v63 = vmul.f32 25.0, %v1427_v3 }
 0x17a   : > { %472 = vst.msk [vmem:[#allocation3 + $0xa] sm:$0xff] %vm470_vm4, %v463_v11  ;;  %473 = vst.msk [vmem:[#allocation3 + $0x1a] sm:$0xff] %vm470_vm4, %v464_v12 }
 0x17b   : > { %v445_v17 = vpop.permute.xlu1 %444  ;;  %v447_v18 = vpop.permute.xlu0 %446 }
 0x17c   : > { %v465_v21 = vadd.f32 %v445_v17, %v433_v15  ;;  %v466_v25 = vadd.f32 %v447_v18, %v434_v16  ;;  %v585_v15 = vsub.f32 %v1534_v48, %v1422_v2 }
 0x17d   : > { %v479_v26 = vld [vmem:[#allocation3] sm:$0xff] }
 0x17e   : > { %v487_v27 = vld [vmem:[#allocation3 + $0x1] sm:$0xff]  ;;  %474 = vst.msk [vmem:[#allocation3 + $0x22] sm:$0xff] %vm470_vm4, %v465_v21  ;;  %475 = vst.msk [vmem:[#allocation3 + $0x32] sm:$0xff] %vm470_vm4, %v466_v25  ;;  %v584_v25 = vsub.f32 %v251_v59, %v1427_v3  ;;  %v256_v3 = vld [vmem:[%s1381_s7 + $0x30] sm:$0xff] }
 0x17f   : > { %v495_v23 = vadd.f32 %v487_v27, %v479_v26  ;;  %v449_v30 = vpop.permute.xlu1 %448  ;;  %v451_v31 = vpop.permute.xlu0 %450  ;;  %v503_v33 = vld [vmem:[#allocation3 + $0x2] sm:$0xff]  ;;  %v554_v26 = vmul.f32 25.0, %v1430_v4 }
 0x180   : > { %v467_v35 = vadd.f32 %v449_v30, %v435_v22  ;;  %v468_v36 = vadd.f32 %v451_v31, %v436_v29  ;;  %v555_v30 = vmul.f32 25.0, %v1435_v5  ;;  %v587_v31 = vsub.f32 %v1543_v9, %v1435_v5 }
 0x181   : > { %v511_v37 = vadd.f32 %v503_v33, %v495_v23  ;;  %v519_v38 = vld [vmem:[#allocation3 + $0x3] sm:$0xff]  ;;  %v481_v46 = vld [vmem:[#allocation3 + $0x18] sm:$0xff]  ;;  %v520_v60 = vld [vmem:[#allocation3 + $0xb] sm:$0xff]  ;;  %v589_v9 = vsub.f32 %v256_v3, %v1443_v7 }
 0x182   : > { %v480_v39 = vld [vmem:[#allocation3 + $0x8] sm:$0xff]  ;;  %476 = vst.msk [vmem:[#allocation3 + $0x3a] sm:$0xff] %vm470_vm4, %v467_v35  ;;  %477 = vst.msk [vmem:[#allocation3 + $0x4a] sm:$0xff] %vm470_vm4, %v468_v36  ;;  %v489_v47 = vld [vmem:[#allocation3 + $0x19] sm:$0xff] }
 0x183   : > { %v527_v42 = vadd.f32 %v519_v38, %v511_v37  ;;  %v488_v43 = vld [vmem:[#allocation3 + $0x9] sm:$0xff]  ;;  %v453_v44 = vpop.permute.xlu1 %452  ;;  %v497_v52 = vadd.f32 %v489_v47, %v481_v46  ;;  %v505_v54 = vld [vmem:[#allocation3 + $0x1a] sm:$0xff]  ;;  %v556_v37 = vmul.f32 25.0, %v1438_v6 }
 0x184   : > { %v535_v40 = vld [vmem:[#allocation3 + $0x4] sm:$0xff]  ;;  %v496_v45 = vadd.f32 %v488_v43, %v480_v39  ;;  %v469_v49 = vadd.f32 %v453_v44, %v437_v32  ;;  %v536_v17 = vld [vmem:[#allocation3 + $0xc] sm:$0xff] }
 0x185   : > { %v543_v50 = vadd.f32 %v535_v40, %v527_v42  ;;  %v504_v51 = vld [vmem:[#allocation3 + $0xa] sm:$0xff]  ;;  %v521_v55 = vld [vmem:[#allocation3 + $0x1b] sm:$0xff]  ;;  %v513_v61 = vadd.f32 %v505_v54, %v497_v52  ;;  %v507_v22 = vld [vmem:[#allocation3 + $0x32] sm:$0xff] }
 0x186   : > { %v512_v53 = vadd.f32 %v504_v51, %v496_v45  ;;  %v482_v56 = vld [vmem:[#allocation3 + $0x20] sm:$0xff]  ;;  %478 = vst.msk [vmem:[#allocation3 + $0x52] sm:$0xff] %vm470_vm4, %v469_v49  ;;  %v483_v13 = vld [vmem:[#allocation3 + $0x30] sm:$0xff] }
 0x187   : > { %vm559_vm5 = vcmp.ne.f32.partialorder %v543_v50, %v551_v24  ;;  %v490_v62 = vld [vmem:[#allocation3 + $0x21] sm:$0xff]  ;;  %v491_v14 = vld [vmem:[#allocation3 + $0x31] sm:$0xff]  ;;  %v529_v18 = vadd.f32 %v521_v55, %v513_v61  ;;  %v557_v61 = vmul.f32 25.0, %v1443_v7 }
 0x188   : > { %v1546_v10 = vsel %vm559_vm5, 1.0, %v1189_v0  ;;  %v528_v11 = vadd.f32 %v520_v60, %v512_v53  ;;  %v498_v12 = vadd.f32 %v490_v62, %v482_v56  ;;  %v537_v19 = vld [vmem:[#allocation3 + $0x1c] sm:$0xff]  ;;  %v499_v21 = vadd.f32 %v491_v14, %v483_v13  ;;  %v538_v43 = vld [vmem:[#allocation3 + $0x24] sm:$0xff] }
 0x189   : > { %v690_v16 = vsel %vm470_vm4, %v1546_v10, 0.0  ;;  %v506_v20 = vld [vmem:[#allocation3 + $0x22] sm:$0xff]  ;;  %v523_v29 = vld [vmem:[#allocation3 + $0x33] sm:$0xff]  ;;  %v545_v33 = vadd.f32 %v537_v19, %v529_v18  ;;  %v509_v51 = vld [vmem:[#allocation3 + $0x4a] sm:$0xff]  ;;  %v591_v18 = vand.u32 2147483647, %v583_v57 }
 0x18a   : > { %691 = vadd.xlane.f32.xlu1 %v690_v16  ;;  %v544_v27 = vadd.f32 %v536_v17, %v528_v11  ;;  %v514_v28 = vadd.f32 %v506_v20, %v498_v12  ;;  %v484_v23 = vld [vmem:[#allocation3 + $0x38] sm:$0xff]  ;;  %v522_v34 = vld [vmem:[#allocation3 + $0x23] sm:$0xff]  ;;  %v515_v35 = vadd.f32 %v507_v22, %v499_v21  ;;  %v593_v57 = vand.u32 2147483647, %v585_v15 }
 0x18b   : > { %v492_v36 = vld [vmem:[#allocation3 + $0x39] sm:$0xff]  ;;  %v485_v24 = vld [vmem:[#allocation3 + $0x48] sm:$0xff]  ;;  %vm561_vm7 = vcmp.ne.f32.partialorder %v545_v33, %v553_v58  ;;  %v592_v58 = vand.u32 2147483647, %v584_v25  ;;  %v595_v25 = vand.u32 2147483647, %v587_v31  ;;  %v599_v41 = vmul.f32 %v1546_v10, %v591_v18 }
 0x18c   : > { %vm560_vm6 = vcmp.ne.f32.partialorder %v544_v27, %v552_v63  ;;  %v530_v38 = vadd.f32 %v522_v34, %v514_v28  ;;  %v500_v39 = vadd.f32 %v492_v36, %v484_v23  ;;  %v493_v32 = vld [vmem:[#allocation3 + $0x49] sm:$0xff]  ;;  %v531_v44 = vadd.f32 %v523_v29, %v515_v35  ;;  %v539_v40 = vld [vmem:[#allocation3 + $0x34] sm:$0xff]  ;;  %v540_v12 = vld [vmem:[#allocation3 + $0x3c] sm:$0xff] }
 0x18d   : > { %v942_v42 = vsel %vm560_vm6, 1.0, %v1189_v0  ;;  %v508_v45 = vld [vmem:[#allocation3 + $0x3a] sm:$0xff]  ;;  %v501_v5 = vadd.f32 %v493_v32, %v485_v24  ;;  %v943_v47 = vsel %vm561_vm7, 1.0, %v1189_v0  ;;  %v525_v52 = vld [vmem:[#allocation3 + $0x4b] sm:$0xff]  ;;  %v597_v33 = vand.u32 2147483647, %v589_v9 }
 0x18e   : > { %v693_v46 = vsel %vm470_vm4, %v942_v42, 0.0  ;;  %v546_v49 = vadd.f32 %v538_v43, %v530_v38  ;;  %v516_v50 = vadd.f32 %v508_v45, %v500_v39  ;;  %v486_v53 = vld [vmem:[#allocation3 + $0x50] sm:$0xff]  ;;  %v696_v54 = vsel %vm470_vm4, %v943_v47, 0.0  ;;  %v524_v56 = vld [vmem:[#allocation3 + $0x3b] sm:$0xff]  ;;  %v255_v23 = vld [vmem:[%s1381_s7 + $0x28] sm:$0xff] }
 0x18f   : > { %694 = vadd.xlane.f32.xlu0 %v693_v46  ;;  %v547_v55 = vadd.f32 %v539_v40, %v531_v44  ;;  %v517_v59 = vadd.f32 %v509_v51, %v501_v5  ;;  %v494_v60 = vld [vmem:[#allocation3 + $0x51] sm:$0xff]  ;;  %697 = vadd.xlane.f32.xlu1 %v696_v54  ;;  %v600_v21 = vmul.f32 %v942_v42, %v592_v58  ;;  %v558_v39 = vmul.f32 25.0, %v1446_v8 }
 0x190   : > { %vm562_vm8 = vcmp.ne.f32.partialorder %v546_v49, %v554_v26  ;;  %v532_v62 = vadd.f32 %v524_v56, %v516_v50  ;;  %v502_v63 = vadd.f32 %v494_v60, %v486_v53  ;;  %v541_v19 = vld [vmem:[#allocation3 + $0x4c] sm:$0xff]  ;;  %v253_v20 = vld [vmem:[%s1381_s7 + $0x18] sm:$0xff]  ;;  %v588_v36 = vsub.f32 %v255_v23, %v1438_v6 }
 0x191   : > { %v944_v11 = vsel %vm562_vm8, 1.0, %v1189_v0  ;;  %vm563_vm9 = vcmp.ne.f32.partialorder %v547_v55, %v555_v30  ;;  %v533_v13 = vadd.f32 %v525_v52, %v517_v59  ;;  %v510_v27 = vld [vmem:[#allocation3 + $0x52] sm:$0xff]  ;;  %v586_v29 = vsub.f32 %v253_v20, %v1430_v4 }
 0x192   : > { %v699_v14 = vsel %vm470_vm4, %v944_v11, 0.0  ;;  %v945_v16 = vsel %vm563_vm9, 1.0, %v1189_v0  ;;  %v548_v17 = vadd.f32 %v540_v12, %v532_v62  ;;  %v518_v28 = vadd.f32 %v510_v27, %v502_v63  ;;  %v526_v34 = vld [vmem:[#allocation3 + $0x53] sm:$0xff] }
 0x193   : > { %700 = vadd.xlane.f32.xlu0 %v699_v14  ;;  %v702_v7 = vsel %vm470_vm4, %v945_v16, 0.0  ;;  %v549_v26 = vadd.f32 %v541_v19, %v533_v13  ;;  %v610_v30 = vsel %vm470_vm4, %v600_v21, 0.0  ;;  %v603_v31 = vmul.f32 %v945_v16, %v595_v25  ;;  %v257_v38 = vld [vmem:[%s1381_s7 + $0x38] sm:$0xff]  ;;  %s1081_s7 = scalar_lea.vmem %s1633_s17, 16 }
 0x194   : > { %703 = vadd.xlane.f32.xlu1 %v702_v7  ;;  %vm564_vm10 = vcmp.ne.f32.partialorder %v548_v17, %v556_v37  ;;  %v534_v4 = vadd.f32 %v526_v34, %v518_v28  ;;  %v607_v37 = vsel %vm470_vm4, %v599_v41, 0.0  ;;  %v601_v10 = vmul.f32 %v943_v47, %v593_v57  ;;  %v542_v15 = vld [vmem:[#allocation3 + $0x54] sm:$0xff]  ;;  %p1082_p13 = scmp.ne.s32.totalorder %s1633_s17, %s1081_s7  ;;  %p1089_p7 = scmp.lt.s32.totalorder %s1087_s23, %s1081_s7 }
 0x195   : > { %v946_v22 = vsel %vm564_vm10, 1.0, %v1189_v0  ;;  %vm565_vm11 = vcmp.ne.f32.partialorder %v549_v26, %v557_v61  ;;  %v594_v3 = vand.u32 2147483647, %v586_v29  ;;  %v619_v2 = vsel %vm470_vm4, %v603_v31, 0.0 }
 0x196   : > { %v705_v1 = vsel %vm470_vm4, %v946_v22, 0.0  ;;  %v947_v35 = vsel %vm565_vm11, 1.0, %v1189_v0  ;;  %v550_v24 = vadd.f32 %v542_v15, %v534_v4  ;;  %v590_v32 = vsub.f32 %v257_v38, %v1446_v8  ;;  %p1083_p12 = pnand %p1082_p13, %p1730_p1  ;;  %p1090_p9 = por %p1089_p7, %p1088_p5 }
 0x197   : > { %706 = vadd.xlane.f32.xlu0 %v705_v1  ;;  %v605_v48 = vmul.f32 %v947_v35, %v597_v33  ;;  %v613_v42 = vsel %vm470_vm4, %v601_v10, 0.0  ;;  %v602_v43 = vmul.f32 %v944_v11, %v594_v3  ;;  %v596_v6 = vand.u32 2147483647, %v588_v36 }
 0x198   : > { %611 = vadd.xlane.f32.xlu1 %v610_v30  ;;  %vm566_vm12 = vcmp.ne.f32.partialorder %v550_v24, %v558_v39  ;;  %v598_v5 = vand.u32 2147483647, %v590_v32  ;;  %v708_v46 = vsel %vm470_vm4, %v947_v35, 0.0  ;;  %v639_v59 = vlaneseq  ;;  %p1084_p10 = pneg %p1083_p12 }
 0x199   : > { %v625_v44 = vsel %vm470_vm4, %v605_v48, 0.0  ;;  %v616_v40 = vsel %vm470_vm4, %v602_v43, 0.0  ;;  %v604_v45 = vmul.f32 %v946_v22, %v596_v6  ;;  %v948_v47 = vsel %vm566_vm12, 1.0, %v1189_v0 }
 0x19a   : > { %v606_v49 = vmul.f32 %v948_v47, %v598_v5  ;;  %v711_v51 = vsel %vm470_vm4, %v948_v47, 0.0  ;;  %v640_v61 = vand.u32 127, %v639_v59  ;;  %v642_v11 = vshrl.u32 %v639_v59, 7  ;;  %p1091_p11 = pnand %p1090_p9, %p1084_p10 }
 0x19b   : > { %608 = vadd.xlane.f32.xlu0 %v607_v37  ;;  %v622_v8 = vsel %vm470_vm4, %v604_v45, 0.0 }
 0x19c   : > { %620 = vadd.xlane.f32.xlu1 %v619_v2  ;;  %v628_v50 = vsel %vm470_vm4, %v606_v49, 0.0  ;;  %v645_v63 = vadd.s32 4294967288, %v640_v61  ;;  %v1597_v14 = vsub.s32 %v640_v61, %v642_v11 }
 0x19e   : > { %v648_v13 = vsub.s32 %v645_v63, %v642_v11 }
 0x19f   : > { %614 = vadd.xlane.f32.xlu0 %v613_v42 }
 0x1a0   : > { %626 = vadd.xlane.f32.xlu1 %v625_v44 }
 0x1a3   : > { %617 = vadd.xlane.f32.xlu0 %v616_v40 }
 0x1a4   : > { %709 = vadd.xlane.f32.xlu1 %v708_v46 }
 0x1a7   : > { %623 = vadd.xlane.f32.xlu0 %v622_v8 }
 0x1ab   : > { %629 = vadd.xlane.f32.xlu0 %v628_v50 }
 0x1af   : > { %712 = vadd.xlane.f32.xlu0 %v711_v51 }
 0x217   : > { %v692_v52 = vpop.xlane.xlu1 %691 }
 0x218   : > { %v725_v35 = vrot.slane %v692_v52, %v1597_v14 }
 0x21c   : > { %v695_v53 = vpop.xlane.xlu0 %694  ;;  %v698_v54 = vpop.xlane.xlu1 %697 }
 0x21d   : > { %v729_v28 = vrot.slane %v695_v53, %v648_v13  ;;  %v734_v41 = vrot.slane %v698_v54, %v1597_v14 }
 0x21f   : > { %v730_v2 = vsel %vm650_vm13, %v729_v28, %v725_v35 }
 0x220   : > { %v701_v55 = vpop.xlane.xlu0 %700 }
 0x221   : > { %v704_v56 = vpop.xlane.xlu1 %703  ;;  %v738_v25 = vrot.slane %v701_v55, %v648_v13 }
 0x222   : > { %v743_v31 = vrot.slane %v704_v56, %v1597_v14 }
 0x223   : > { %v739_v4 = vsel %vm650_vm13, %v738_v25, %v734_v41 }
 0x224   : > { %v707_v58 = vpop.xlane.xlu0 %706  ;;  %v758_v24 = vsel %vm679_vm14, %v739_v4, %v730_v2 }
 0x225   : > { %v612_v60 = vpop.xlane.xlu1 %611  ;;  %v747_v22 = vrot.slane %v707_v58, %v648_v13 }
 0x226   : > { %v649_v26 = vrot.slane %v612_v60, %v648_v13 }
 0x227   : > { %v748_v10 = vsel %vm650_vm13, %v747_v22, %v743_v31 }
 0x228   : > { %v609_v0 = vpop.xlane.xlu0 %608  ;;  %v759_v42 = vsel %vm681_vm0, %v748_v10, %v758_v24 }
 0x229   : > { %v621_v9 = vpop.xlane.xlu1 %620  ;;  %v644_v19 = vrot.slane %v609_v0, %v1597_v14 }
 0x22a   : > { %v664_v21 = vrot.slane %v621_v9, %v1597_v14 }
 0x22b   : > { %v651_v57 = vsel %vm650_vm13, %v649_v26, %v644_v19 }
 0x22c   : > { %v615_v62 = vpop.xlane.xlu0 %614 }
 0x22d   : > { %v627_v17 = vpop.xlane.xlu1 %626  ;;  %v655_v20 = vrot.slane %v615_v62, %v1597_v14 }
 0x22e   : > { %v673_v23 = vrot.slane %v627_v17, %v1597_v14 }
 0x230   : > { %v618_v12 = vpop.xlane.xlu0 %617 }
 0x231   : > { %v659_v16 = vrot.slane %v618_v12, %v648_v13  ;;  %v710_v33 = vpop.xlane.xlu1 %709 }
 0x232   : > { %v752_v48 = vrot.slane %v710_v33, %v1597_v14 }
 0x233   : > { %v660_v27 = vsel %vm650_vm13, %v659_v16, %v655_v20 }
 0x234   : > { %v624_v18 = vpop.xlane.xlu0 %623  ;;  %v680_v34 = vsel %vm679_vm14, %v660_v27, %v651_v57 }
 0x235   : > { %v668_v7 = vrot.slane %v624_v18, %v648_v13 }
 0x237   : > { %v669_v29 = vsel %vm650_vm13, %v668_v7, %v664_v21 }
 0x238   : > { %v630_v1 = vpop.xlane.xlu0 %629  ;;  %v682_v37 = vsel %vm681_vm0, %v669_v29, %v680_v34 }
 0x239   : > { %v677_v30 = vrot.slane %v630_v1, %v648_v13 }
 0x23b   : > { %v678_v36 = vsel %vm650_vm13, %v677_v30, %v673_v23 }
 0x23c   : > { %v713_v3 = vpop.xlane.xlu0 %712  ;;  %v684_v38 = vsel %vm683_vm15, %v678_v36, %v682_v37 }
 0x23d   : > { %v756_v15 = vrot.slane %v713_v3, %v648_v13  ;;  %v687_v39 = vsel %vm686_vm1, %v684_v38, 0.0 }
 0x23e   : > { %688 = vadd.xlane.f32.xlu1 %v687_v39 }
 0x23f   : > { %v757_v32 = vsel %vm650_vm13, %v756_v15, %v752_v48 }
 0x240   : > { %v760_v43 = vsel %vm683_vm15, %v757_v32, %v759_v42 }
 0x241   : > { %v762_v6 = vsel %vm686_vm1, %v760_v43, 0.0 }
 0x242   : > { %763 = vadd.xlane.f32.xlu0 %v762_v6 }
 0x2cb   : > { %v689_v44 = vpop.xlane.xlu1 %688 }
 0x2cc   : > { %v769_v40 = vrot.slane %v689_v44, %v1597_v14 }
 0x2ce   : > { %772 = vst.msk [vmem:[%s233_s5] sm:$0x1] %vm771_vm2, %v769_v40 }
 0x2cf   : > { %v764_v45 = vpop.xlane.xlu0 %763 }
 0x2d0   : > { %1094 = shalt.err (!%p1091_p11)
}
 0x2d1   : > { %s1095_s10 = scalar_lea.hbm %s1631_s22, 16  ;;  %s1099_s29 = scalar_lea.hbm %s1719_s2, 32 }
 0x2d2   : > { %p1096_p3 = scmp.ne.s32.totalorder %s1631_s22, %s1095_s10  ;;  %p1100_p2 = scmp.lt.u32.totalorder %s1631_s22, %s1719_s2 }
 0x2d3   : > { %p1101_p4 = scmp.lt.u32.totalorder %s1099_s29, %s1095_s10  ;;  %p1103_p13 = scmp.lt.u32.totalorder %s1095_s10, %s1631_s22 }
 0x2d4   : > { %p1097_p8 = pnand %p1096_p3, %p1730_p1 }
 0x2d5   : > { %p1102_p6 = por %p1101_p4, %p1100_p2 }
 0x2d6   : > { %p1098_p0 = pneg %p1097_p8 }
 0x2d7   : > { %p1104_p12 = por %p1103_p13, %p1102_p6 }
 0x2d9   : > { %p1105_p10 = pnand %p1104_p12, %p1098_p0 }
 0x2db   : > { %1108 = shalt.err (!%p1105_p10)
}
 0x2dc   : > { %961 = dma.vmem_to_hbm [thread:$0]  (%p1730_p1), %s1633_s17, 16, %s1631_s22, %s781_s27   ;;  %v777_v5 = vrot.slane %v764_v45, %v1597_v14 }
 0x2dd   : > { %s1669_s26 = scalar_lea.hbm %s1720_s3, %s949_s4  ;;  %s785_s9 = scalar_lea.sflag [#allocation11], %s1377_s6 }
 0x2de   : > { %779 = vst.msk [vmem:[%s239_s8] sm:$0x1] %vm771_vm2, %v777_v5  ;;  %s1109_s23 = scalar_lea.vmem %s1672_s30, 16  ;;  %s1196_s16 = smov [#allocation10]  }
 0x2df   : > { %p1110_p5 = scmp.ne.s32.totalorder %s1672_s30, %s1109_s23  ;;  %s1113_s17 = sshll.u32 %s1196_s16, 4  ;;  %s1114_s17 = int_to_ptr.vmem [resolvable:$false] %s1113_s17 }
 0x2e0   : > { %s1115_s22 = scalar_lea.vmem %s1114_s17, 32  ;;  %p1116_p11 = scmp.lt.s32.totalorder %s1672_s30, %s1114_s17 }
 0x2e1   : > { %p1111_p7 = pnand %p1110_p5, %p1730_p1  ;;  %p1117_p3 = scmp.lt.s32.totalorder %s1115_s22, %s1109_s23 }
 0x2e3   : > { %p1112_p9 = pneg %p1111_p7  ;;  %p1118_p8 = por %p1117_p3, %p1116_p11 }
 0x2e5   : > { %p1119_p0 = pnand %p1118_p8, %p1112_p9 }
 0x2e7   : > { %1122 = shalt.err (!%p1119_p0)
}
 0x2e8   : > { %s1123_s6 = scalar_lea.hbm %s1669_s26, 16  ;;  %s1127_s27 = scalar_lea.hbm %s1720_s3, 32 }
 0x2e9   : > { %p1124_p2 = scmp.ne.s32.totalorder %s1669_s26, %s1123_s6  ;;  %p1128_p13 = scmp.lt.u32.totalorder %s1669_s26, %s1720_s3 }
 0x2ea   : > { %p1129_p12 = scmp.lt.u32.totalorder %s1127_s27, %s1123_s6  ;;  %p1131_p5 = scmp.lt.u32.totalorder %s1123_s6, %s1669_s26 }
 0x2eb   : > { %p1125_p4 = pnand %p1124_p2, %p1730_p1 }
 0x2ec   : > { %p1130_p10 = por %p1129_p12, %p1128_p13 }
 0x2ed   : > { %p1126_p6 = pneg %p1125_p4 }
 0x2ee   : > { %p1132_p7 = por %p1131_p5, %p1130_p10 }
 0x2f0   : > { %p1133_p9 = pnand %p1132_p7, %p1126_p6 }
 0x2f2   : > { %1136 = shalt.err (!%p1133_p9)
}
 0x2f3   : > { %962 = dma.vmem_to_hbm [thread:$0]  (%p1730_p1), %s1672_s30, 16, %s1669_s26, %s785_s9  }
 0x2f4 PF: > { %s822_s20 = sand.u32 1, %s1171_s12   ;;  %p1731_p11 = scmp.ne.s32.totalorder %s1726_s25, 0 }
 0x2f5   : > { %p1732_p3 = scmp.ge.s32.totalorder %s1183_s15, 2  ;;  %s823_s29 = scalar_lea.sflag [#allocation6], %s822_s20 }
 0x2f7   : > { %p973_p8 = pnand %p1732_p3, %p1731_p11 }
 0x2f9   : > { %1162 = dma.done.wait (!%p973_p8), %s823_s29, 16  }
 0x2fa   : > { %1164 = vsyncadd (!%p973_p8), %s823_s29, 4294967280  ;;  %s831_s5 = scalar_lea.sflag [#allocation11], %s822_s20 }
 0x2fb   : > { %1166 = dma.done.wait (!%p973_p8), %s831_s5, 16  }
 0x2fc   : > { %1168 = vsyncadd (!%p973_p8), %s831_s5, 4294967280  ;;  %p23_p1 = scmp.ge.s32.totalorder %s1242_s18, 4   ;;  %s1733_s12 = smov %s1175_s13 }
 0x2fd   : > { %s1734_s13 = smov %s1179_s14  ;;  %s1735_s14 = smov %s1254_s21 }
 0x2fe   : > { %s1736_s15 = smov %s1242_s18  ;;  %25 = sbr.rel (!%p23_p1) target bundleno = 9 (0x9), region = 103 }
 0x305   :  { %835 = vsyncpa [#allocation5], 1 }
 0x306   :  { %837 = vsyncpa [#allocation5 + $0x1], 1 }
 0x307   :  { %838 = vsyncpa [#allocation8], 1 }
 0x308   :  { %840 = vsyncpa [#allocation8 + $0x1], 1 }
 0x309   :  { %841 = vsyncpa [#allocation6], 1 }
 0x30a   :  { %843 = vsyncpa [#allocation6 + $0x1], 1 }
 0x30b   :  { %844 = vsyncpa [#allocation11], 1 }
 0x30c   :  { %846 = vsyncpa [#allocation11 + $0x1], 1 }

</bundles_post_ra>
